<compile_context>
chip_gen: v6e
topology: v6e:2x2x1
jax: 0.10.0
libtpu: 0.0.40
codegen_flags: <defaults>
</compile_context>

<pallas_src>
import jax
import jax.numpy as jnp
from jax.experimental import pallas as pl
from jax.experimental.pallas import tpu as pltpu

_EPS = 1e-5


def _fused_conv3x3_weights(w_oihw, W, dtype=jnp.bfloat16):
    """OIHW 3x3 weight -> one (3*W*Cin, W*Cout) banded matmul slab.

    Row index = dh*W*Cin + w*Cin + ci (dh = vertical tap, w = interior input
    pixel, ci = input channel); column index = wo*Cout + co.  The conv's
    zero-padding columns contribute nothing, so their rows are omitted
    entirely: the fused K dimension is exactly 3*W*Cin (a multiple of 128 at
    the test shape) and the kernel never materializes column halos.
    """
    Cout, Cin, KH, KW = w_oihw.shape
    w_hwio = jnp.transpose(w_oihw, (2, 3, 1, 0)).astype(jnp.float32)  # (3,3,Ci,Co)
    bands = []
    for dh in range(KH):
        m = jnp.zeros((W, Cin, W, Cout), jnp.float32)
        for kw in range(KW):
            # interior pixel w feeds output wo through tap kw iff w == wo + kw - 1
            sel = jnp.eye(W, W, k=1 - kw, dtype=jnp.float32)  # sel[w, wo]
            m = m + jnp.einsum("pw,io->piwo", sel, w_hwio[dh, kw])
        bands.append(m.reshape(W * Cin, W * Cout))
    return jnp.concatenate(bands, axis=0).astype(dtype)       # (3*W*Cin, W*Cout)


def basic_block_forward(x_nchw, w1_oihw, g1, b1, w2_oihw, g2, b2):
    """x_nchw: (N, C, H, W) float32.  Returns (N, C, H, W) float32."""
    N, C, H, W = x_nchw.shape
    assert w1_oihw.shape[0] == C and w1_oihw.shape[1] == C, \
        "default BasicBlock: downsample=None, inplanes==planes, stride=1"
    assert w2_oihw.shape[0] == C and w2_oihw.shape[1] == C
    assert (W & (W - 1)) == 0, "roll-tree BN pooling assumes power-of-two W"
    WC = W * C                  # lane-dense output width (128 at test shape)
    K3 = 3 * WC                 # fused conv K dimension (multiple of 128)
    cnt = N * H * W
    inv_cnt = 1.0 / cnt
    n_pool_steps = max(W.bit_length() - 1, 0)   # log2(W)

    # NCHW -> NHWC -> lane-dense 2-D slab (N*H, W*C); lane index = w*C + c.
    x2d = jnp.transpose(x_nchw, (0, 2, 3, 1)).astype(jnp.float32).reshape(N * H, WC)

    # Both conv weights in one (2, 3*W*C, W*C) bf16 slab.
    wslab = jnp.stack([_fused_conv3x3_weights(w1_oihw, W),
                       _fused_conv3x3_weights(w2_oihw, W)], axis=0)
    # All four BN affine vectors, lane-tiled to the (w, c) pattern, in one input.
    gb = jnp.stack([jnp.tile(p.astype(jnp.float32), W)
                    for p in (g1, b1, g2, b2)], axis=0)        # (4, W*C)

    def kernel(x_ref, w_ref, gb_ref, o_ref, im2row_ref):
        # im2row_ref: (N, H, 3*W*C) bf16.  Band dh occupies lanes
        # [dh*WC, (dh+1)*WC); row h of band dh holds padded input row h+dh.
        # Only the two row-padding bands need zeroing; written once, reused
        # by both convolutions (their interiors are overwritten each time).
        zrow = jnp.zeros((N, 1, WC), jnp.bfloat16)
        im2row_ref[:, 0:1, 0:WC] = zrow                       # top padding row
        im2row_ref[:, H - 1:H, 2 * WC:K3] = zrow              # bottom padding row

        def conv3x3(a, slab_idx):
            # Single fused MXU matmul: (N*H, 3*W*C) x (3*W*C, W*C),
            # bf16 operands, f32 accumulation.  All band stores lane-aligned.
            ab = a.astype(jnp.bfloat16).reshape(N, H, WC)
            im2row_ref[:, 1:H, 0:WC] = ab[:, 0:H - 1, :]      # row above
            im2row_ref[:, :, WC:2 * WC] = ab                   # same row
            im2row_ref[:, 0:H - 1, 2 * WC:K3] = ab[:, 1:H, :]  # row below
            lhs = im2row_ref[...].reshape(N * H, K3)
            return jnp.dot(lhs, w_ref[slab_idx],
                           preferred_element_type=jnp.float32)

        def batchnorm(acc, g_lane, b_lane):
            # Training-mode BN forward, single-pass batch statistics.
            # Per-channel pooling of the (1, W*C) sum rows via a log2(W)
            # roll+add tree (XLU), already broadcast back to the lane pattern.
            s1 = jnp.sum(acc, axis=0, keepdims=True)           # (1, W*C)
            s2 = jnp.sum(acc * acc, axis=0, keepdims=True)     # (1, W*C)
            stats = jnp.concatenate([s1, s2], axis=0)          # (2, W*C)
            shift = C
            for _ in range(n_pool_steps):
                stats = stats + pltpu.roll(stats, shift=shift, axis=1)
                shift *= 2
            mean_l = stats[0:1, :] * inv_cnt
            ex2_l = stats[1:2, :] * inv_cnt
            var_l = ex2_l - mean_l * mean_l
            scale = g_lane * jax.lax.rsqrt(var_l + _EPS)
            return acc * scale + (b_lane - mean_l * scale)

        x = x_ref[...]                                         # (N*H, W*C) f32

        # ---- conv1 -> bn1 -> relu
        out1 = jnp.maximum(
            batchnorm(conv3x3(x, 0), gb_ref[0:1, :], gb_ref[1:2, :]), 0.0)

        # ---- conv2 -> bn2 (scratch bands reused; padding rows still zero)
        out2 = batchnorm(conv3x3(out1, 1), gb_ref[2:3, :], gb_ref[3:4, :])

        # ---- residual add (identity path) + relu; full-width lane-dense store
        o_ref[...] = jnp.maximum(out2 + x, 0.0)

    vmem = pl.BlockSpec(memory_space=pltpu.MemorySpace.VMEM)
    out2d = pl.pallas_call(
        kernel,
        out_shape=jax.ShapeDtypeStruct((N * H, WC), jnp.float32),
        in_specs=[vmem, vmem, vmem],
        out_specs=vmem,
        scratch_shapes=[pltpu.VMEM((N, H, K3), jnp.bfloat16)],
    )(x2d, wslab, gb)

    return jnp.transpose(out2d.reshape(N, H, W, C), (0, 3, 1, 2))   # back to NCHW


def basic_block_reference(x_nchw, w1_oihw, g1, b1, w2_oihw, g2, b2):
    """Pure-JAX f32 reference (same semantics) for a correctness check."""
    x = jnp.transpose(x_nchw, (0, 2, 3, 1)).astype(jnp.float32)

    def conv(inp, w_oihw):
        w = jnp.transpose(w_oihw, (2, 3, 1, 0)).astype(jnp.float32)
        return jax.lax.conv_general_dilated(
            inp, w, window_strides=(1, 1), padding="SAME",
            dimension_numbers=("NHWC", "HWIO", "NHWC"))

    def bn(y, g, b):
        m = jnp.mean(y, axis=(0, 1, 2), keepdims=True)
        v = jnp.mean((y - m) ** 2, axis=(0, 1, 2), keepdims=True)
        return (y - m) * jax.lax.rsqrt(v + _EPS) * g.reshape(1, 1, 1, -1) \
            + b.reshape(1, 1, 1, -1)

    out = jnp.maximum(bn(conv(x, w1_oihw), g1, b1), 0.0)
    out = bn(conv(out, w2_oihw), g2, b2)
    out = jnp.maximum(out + x, 0.0)
    return jnp.transpose(out, (0, 3, 1, 2))


if __name__ == "__main__":
    # Small shapes: batch=2, inplanes=planes=8, spatial=16x16, stride=1.
    N, C, H, W = 2, 8, 16, 16
    key = jax.random.PRNGKey(0)
    k_x, k_w1, k_w2, k_g1, k_b1, k_g2, k_b2 = jax.random.split(key, 7)

    x = jax.random.normal(k_x, (N, C, H, W), dtype=jnp.float32)
    # conv weights in PyTorch OIHW convention, deterministic init
    w1 = 0.1 * jax.random.normal(k_w1, (C, C, 3, 3), dtype=jnp.float32)
    w2 = 0.1 * jax.random.normal(k_w2, (C, C, 3, 3), dtype=jnp.float32)
    # BatchNorm affine params (perturbed from PyTorch defaults 1 / 0)
    g1 = 1.0 + 0.1 * jax.random.normal(k_g1, (C,), dtype=jnp.float32)
    b1 = 0.1 * jax.random.normal(k_b1, (C,), dtype=jnp.float32)
    g2 = 1.0 + 0.1 * jax.random.normal(k_g2, (C,), dtype=jnp.float32)
    b2 = 0.1 * jax.random.normal(k_b2, (C,), dtype=jnp.float32)

    out = jax.block_until_ready(basic_block_forward(x, w1, g1, b1, w2, g2, b2))
    ref = jax.block_until_ready(basic_block_reference(x, w1, g1, b1, w2, g2, b2))

    assert out.shape == (N, C, H, W)
    # Tolerance reflects bf16 MXU operands (f32 accumulation) vs. all-f32 ref.
    assert jnp.allclose(out, ref, atol=2e-2, rtol=2e-2), "mismatch vs reference"

    print("KERNEL_OK")
</pallas_src>

<mosaic_0001>
module attributes {stable_mosaic.version = 11 : i64} {
  func.func @kernel(%arg0: memref<32x128xf32, #tpu.memory_space<vmem>>, %arg1: memref<2x384x128xbf16, #tpu.memory_space<vmem>>, %arg2: memref<4x128xf32, #tpu.memory_space<vmem>>, %arg3: memref<32x128xf32, #tpu.memory_space<vmem>>, %arg4: memref<2x16x384xbf16, #tpu.memory_space<vmem>>) attributes {dimension_semantics = [], scalar_prefetch = 0 : i64, scratch_operands = 1 : i64, tpu.core_type = #tpu.core_type<tc>} {
    %cst = arith.constant 0.000000e+00 : bf16
    %0 = vector.broadcast %cst : bf16 to vector<2x1x128xbf16>
    %c0 = arith.constant 0 : index
    %c0_0 = arith.constant 0 : index
    %c0_1 = arith.constant 0 : index
    %1 = vector.load %arg4[%c0, %c0_0, %c0_1] : memref<2x16x384xbf16, #tpu.memory_space<vmem>>, vector<2x1x128xbf16>
    tpu.vector_store %arg4[%c0, %c0_0, %c0_1], %0 {strides = array<i32>} : memref<2x16x384xbf16, #tpu.memory_space<vmem>>, vector<2x1x128xbf16>,
    %c0_2 = arith.constant 0 : index
    %c15 = arith.constant 15 : index
    %c256 = arith.constant 256 : index
    %2 = vector.load %arg4[%c0_2, %c15, %c256] : memref<2x16x384xbf16, #tpu.memory_space<vmem>>, vector<2x1x128xbf16>
    tpu.vector_store %arg4[%c0_2, %c15, %c256], %0 {strides = array<i32>} : memref<2x16x384xbf16, #tpu.memory_space<vmem>>, vector<2x1x128xbf16>,
    %c0_3 = arith.constant 0 : index
    %c0_4 = arith.constant 0 : index
    %3 = vector.load %arg0[%c0_3, %c0_4] : memref<32x128xf32, #tpu.memory_space<vmem>>, vector<32x128xf32>
    %4 = arith.truncf %3 : vector<32x128xf32> to vector<32x128xbf16>
    %5 = vector.shape_cast %4 : vector<32x128xbf16> to vector<2x16x128xbf16>
    %6 = vector.extract_strided_slice %5 {offsets = [0, 0, 0], sizes = [2, 15, 128], strides = [1, 1, 1]} : vector<2x16x128xbf16> to vector<2x15x128xbf16>
    %c0_5 = arith.constant 0 : index
    %c1 = arith.constant 1 : index
    %c0_6 = arith.constant 0 : index
    %7 = vector.load %arg4[%c0_5, %c1, %c0_6] : memref<2x16x384xbf16, #tpu.memory_space<vmem>>, vector<2x15x128xbf16>
    tpu.vector_store %arg4[%c0_5, %c1, %c0_6], %6 {strides = array<i32>} : memref<2x16x384xbf16, #tpu.memory_space<vmem>>, vector<2x15x128xbf16>,
    %c0_7 = arith.constant 0 : index
    %c0_8 = arith.constant 0 : index
    %c128 = arith.constant 128 : index
    %8 = vector.load %arg4[%c0_7, %c0_8, %c128] : memref<2x16x384xbf16, #tpu.memory_space<vmem>>, vector<2x16x128xbf16>
    tpu.vector_store %arg4[%c0_7, %c0_8, %c128], %5 {strides = array<i32>} : memref<2x16x384xbf16, #tpu.memory_space<vmem>>, vector<2x16x128xbf16>,
    %9 = vector.extract_strided_slice %5 {offsets = [0, 1, 0], sizes = [2, 15, 128], strides = [1, 1, 1]} : vector<2x16x128xbf16> to vector<2x15x128xbf16>
    %c0_9 = arith.constant 0 : index
    %c0_10 = arith.constant 0 : index
    %c256_11 = arith.constant 256 : index
    %10 = vector.load %arg4[%c0_9, %c0_10, %c256_11] : memref<2x16x384xbf16, #tpu.memory_space<vmem>>, vector<2x15x128xbf16>
    tpu.vector_store %arg4[%c0_9, %c0_10, %c256_11], %9 {strides = array<i32>} : memref<2x16x384xbf16, #tpu.memory_space<vmem>>, vector<2x15x128xbf16>,
    %c0_12 = arith.constant 0 : index
    %c0_13 = arith.constant 0 : index
    %c0_14 = arith.constant 0 : index
    %11 = vector.load %arg4[%c0_12, %c0_13, %c0_14] : memref<2x16x384xbf16, #tpu.memory_space<vmem>>, vector<2x16x384xbf16>
    %12 = vector.shape_cast %11 : vector<2x16x384xbf16> to vector<32x384xbf16>
    %c0_15 = arith.constant 0 : index
    %c0_16 = arith.constant 0 : index
    %c0_17 = arith.constant 0 : index
    %13 = vector.load %arg1[%c0_15, %c0_16, %c0_17] : memref<2x384x128xbf16, #tpu.memory_space<vmem>>, vector<1x384x128xbf16>
    %14 = vector.shape_cast %13 : vector<1x384x128xbf16> to vector<384x128xbf16>
    %cst_18 = arith.constant dense<0.000000e+00> : vector<32x128xf32>
    %15 = tpu.matmul %12, %14, %cst_18 {dimension_numbers = #tpu.dot_dimension_numbers<[1], [0], [0], [1], [0, 0, 1, 1], [], []>} : vector<32x384xbf16>, vector<384x128xbf16>, vector<32x128xf32> -> vector<32x128xf32>
    %c0_19 = arith.constant 0 : index
    %c0_20 = arith.constant 0 : index
    %16 = vector.load %arg2[%c0_19, %c0_20] : memref<4x128xf32, #tpu.memory_space<vmem>>, vector<1x128xf32>
    %c1_21 = arith.constant 1 : index
    %c0_22 = arith.constant 0 : index
    %17 = vector.load %arg2[%c1_21, %c0_22] : memref<4x128xf32, #tpu.memory_space<vmem>>, vector<1x128xf32>
    %cst_23 = arith.constant dense<0.000000e+00> : vector<128xf32>
    %18 = vector.multi_reduction <add>, %15, %cst_23 [0] : vector<32x128xf32> to vector<128xf32>
    %19 = vector.shape_cast %18 : vector<128xf32> to vector<1x128xf32>
    %20 = arith.mulf %15, %15 : vector<32x128xf32>
    %cst_24 = arith.constant dense<0.000000e+00> : vector<128xf32>
    %21 = vector.multi_reduction <add>, %20, %cst_24 [0] : vector<32x128xf32> to vector<128xf32>
    %22 = vector.shape_cast %21 : vector<128xf32> to vector<1x128xf32>
    %23 = tpu.concatenate %19, %22 in 0 : vector<1x128xf32>, vector<1x128xf32> -> vector<2x128xf32>
    %c8_i32 = arith.constant 8 : i32
    %24 = tpu.dynamic_rotate %23 by %c8_i32 dim 1 : vector<2x128xf32>, i32 -> vector<2x128xf32>
    %25 = arith.addf %23, %24 : vector<2x128xf32>
    %c16_i32 = arith.constant 16 : i32
    %26 = tpu.dynamic_rotate %25 by %c16_i32 dim 1 : vector<2x128xf32>, i32 -> vector<2x128xf32>
    %27 = arith.addf %25, %26 : vector<2x128xf32>
    %c32_i32 = arith.constant 32 : i32
    %28 = tpu.dynamic_rotate %27 by %c32_i32 dim 1 : vector<2x128xf32>, i32 -> vector<2x128xf32>
    %29 = arith.addf %27, %28 : vector<2x128xf32>
    %c64_i32 = arith.constant 64 : i32
    %30 = tpu.dynamic_rotate %29 by %c64_i32 dim 1 : vector<2x128xf32>, i32 -> vector<2x128xf32>
    %31 = arith.addf %29, %30 : vector<2x128xf32>
    %32 = vector.extract_strided_slice %31 {offsets = [0, 0], sizes = [1, 128], strides = [1, 1]} : vector<2x128xf32> to vector<1x128xf32>
    %cst_25 = arith.constant 0.001953125 : f32
    %33 = vector.broadcast %cst_25 : f32 to vector<1x128xf32>
    %34 = arith.mulf %32, %33 : vector<1x128xf32>
    %35 = vector.extract_strided_slice %31 {offsets = [1, 0], sizes = [1, 128], strides = [1, 1]} : vector<2x128xf32> to vector<1x128xf32>
    %cst_26 = arith.constant 0.001953125 : f32
    %36 = vector.broadcast %cst_26 : f32 to vector<1x128xf32>
    %37 = arith.mulf %35, %36 : vector<1x128xf32>
    %38 = arith.mulf %34, %34 : vector<1x128xf32>
    %39 = arith.subf %37, %38 : vector<1x128xf32>
    %cst_27 = arith.constant 9.99999974E-6 : f32
    %40 = vector.broadcast %cst_27 : f32 to vector<1x128xf32>
    %41 = arith.addf %39, %40 : vector<1x128xf32>
    %42 = math.rsqrt %41 : vector<1x128xf32>
    %43 = arith.mulf %16, %42 : vector<1x128xf32>
    %44 = vector.broadcast %43 : vector<1x128xf32> to vector<32x128xf32>
    %45 = arith.mulf %15, %44 : vector<32x128xf32>
    %46 = arith.mulf %34, %43 : vector<1x128xf32>
    %47 = arith.subf %17, %46 : vector<1x128xf32>
    %48 = vector.broadcast %47 : vector<1x128xf32> to vector<32x128xf32>
    %49 = arith.addf %45, %48 : vector<32x128xf32>
    %cst_28 = arith.constant 0.000000e+00 : f32
    %50 = vector.broadcast %cst_28 : f32 to vector<32x128xf32>
    %51 = arith.maximumf %49, %50 : vector<32x128xf32>
    %52 = arith.truncf %51 : vector<32x128xf32> to vector<32x128xbf16>
    %53 = vector.shape_cast %52 : vector<32x128xbf16> to vector<2x16x128xbf16>
    %54 = vector.extract_strided_slice %53 {offsets = [0, 0, 0], sizes = [2, 15, 128], strides = [1, 1, 1]} : vector<2x16x128xbf16> to vector<2x15x128xbf16>
    %c0_29 = arith.constant 0 : index
    %c1_30 = arith.constant 1 : index
    %c0_31 = arith.constant 0 : index
    %55 = vector.load %arg4[%c0_29, %c1_30, %c0_31] : memref<2x16x384xbf16, #tpu.memory_space<vmem>>, vector<2x15x128xbf16>
    tpu.vector_store %arg4[%c0_29, %c1_30, %c0_31], %54 {strides = array<i32>} : memref<2x16x384xbf16, #tpu.memory_space<vmem>>, vector<2x15x128xbf16>,
    %c0_32 = arith.constant 0 : index
    %c0_33 = arith.constant 0 : index
    %c128_34 = arith.constant 128 : index
    %56 = vector.load %arg4[%c0_32, %c0_33, %c128_34] : memref<2x16x384xbf16, #tpu.memory_space<vmem>>, vector<2x16x128xbf16>
    tpu.vector_store %arg4[%c0_32, %c0_33, %c128_34], %53 {strides = array<i32>} : memref<2x16x384xbf16, #tpu.memory_space<vmem>>, vector<2x16x128xbf16>,
    %57 = vector.extract_strided_slice %53 {offsets = [0, 1, 0], sizes = [2, 15, 128], strides = [1, 1, 1]} : vector<2x16x128xbf16> to vector<2x15x128xbf16>
    %c0_35 = arith.constant 0 : index
    %c0_36 = arith.constant 0 : index
    %c256_37 = arith.constant 256 : index
    %58 = vector.load %arg4[%c0_35, %c0_36, %c256_37] : memref<2x16x384xbf16, #tpu.memory_space<vmem>>, vector<2x15x128xbf16>
    tpu.vector_store %arg4[%c0_35, %c0_36, %c256_37], %57 {strides = array<i32>} : memref<2x16x384xbf16, #tpu.memory_space<vmem>>, vector<2x15x128xbf16>,
    %c0_38 = arith.constant 0 : index
    %c0_39 = arith.constant 0 : index
    %c0_40 = arith.constant 0 : index
    %59 = vector.load %arg4[%c0_38, %c0_39, %c0_40] : memref<2x16x384xbf16, #tpu.memory_space<vmem>>, vector<2x16x384xbf16>
    %60 = vector.shape_cast %59 : vector<2x16x384xbf16> to vector<32x384xbf16>
    %c1_41 = arith.constant 1 : index
    %c0_42 = arith.constant 0 : index
    %c0_43 = arith.constant 0 : index
    %61 = vector.load %arg1[%c1_41, %c0_42, %c0_43] : memref<2x384x128xbf16, #tpu.memory_space<vmem>>, vector<1x384x128xbf16>
    %62 = vector.shape_cast %61 : vector<1x384x128xbf16> to vector<384x128xbf16>
    %cst_44 = arith.constant dense<0.000000e+00> : vector<32x128xf32>
    %63 = tpu.matmul %60, %62, %cst_44 {dimension_numbers = #tpu.dot_dimension_numbers<[1], [0], [0], [1], [0, 0, 1, 1], [], []>} : vector<32x384xbf16>, vector<384x128xbf16>, vector<32x128xf32> -> vector<32x128xf32>
    %c2 = arith.constant 2 : index
    %c0_45 = arith.constant 0 : index
    %64 = vector.load %arg2[%c2, %c0_45] : memref<4x128xf32, #tpu.memory_space<vmem>>, vector<1x128xf32>
    %c3 = arith.constant 3 : index
    %c0_46 = arith.constant 0 : index
    %65 = vector.load %arg2[%c3, %c0_46] : memref<4x128xf32, #tpu.memory_space<vmem>>, vector<1x128xf32>
    %cst_47 = arith.constant dense<0.000000e+00> : vector<128xf32>
    %66 = vector.multi_reduction <add>, %63, %cst_47 [0] : vector<32x128xf32> to vector<128xf32>
    %67 = vector.shape_cast %66 : vector<128xf32> to vector<1x128xf32>
    %68 = arith.mulf %63, %63 : vector<32x128xf32>
    %cst_48 = arith.constant dense<0.000000e+00> : vector<128xf32>
    %69 = vector.multi_reduction <add>, %68, %cst_48 [0] : vector<32x128xf32> to vector<128xf32>
    %70 = vector.shape_cast %69 : vector<128xf32> to vector<1x128xf32>
    %71 = tpu.concatenate %67, %70 in 0 : vector<1x128xf32>, vector<1x128xf32> -> vector<2x128xf32>
    %c8_i32_49 = arith.constant 8 : i32
    %72 = tpu.dynamic_rotate %71 by %c8_i32_49 dim 1 : vector<2x128xf32>, i32 -> vector<2x128xf32>
    %73 = arith.addf %71, %72 : vector<2x128xf32>
    %c16_i32_50 = arith.constant 16 : i32
    %74 = tpu.dynamic_rotate %73 by %c16_i32_50 dim 1 : vector<2x128xf32>, i32 -> vector<2x128xf32>
    %75 = arith.addf %73, %74 : vector<2x128xf32>
    %c32_i32_51 = arith.constant 32 : i32
    %76 = tpu.dynamic_rotate %75 by %c32_i32_51 dim 1 : vector<2x128xf32>, i32 -> vector<2x128xf32>
    %77 = arith.addf %75, %76 : vector<2x128xf32>
    %c64_i32_52 = arith.constant 64 : i32
    %78 = tpu.dynamic_rotate %77 by %c64_i32_52 dim 1 : vector<2x128xf32>, i32 -> vector<2x128xf32>
    %79 = arith.addf %77, %78 : vector<2x128xf32>
    %80 = vector.extract_strided_slice %79 {offsets = [0, 0], sizes = [1, 128], strides = [1, 1]} : vector<2x128xf32> to vector<1x128xf32>
    %cst_53 = arith.constant 0.001953125 : f32
    %81 = vector.broadcast %cst_53 : f32 to vector<1x128xf32>
    %82 = arith.mulf %80, %81 : vector<1x128xf32>
    %83 = vector.extract_strided_slice %79 {offsets = [1, 0], sizes = [1, 128], strides = [1, 1]} : vector<2x128xf32> to vector<1x128xf32>
    %cst_54 = arith.constant 0.001953125 : f32
    %84 = vector.broadcast %cst_54 : f32 to vector<1x128xf32>
    %85 = arith.mulf %83, %84 : vector<1x128xf32>
    %86 = arith.mulf %82, %82 : vector<1x128xf32>
    %87 = arith.subf %85, %86 : vector<1x128xf32>
    %cst_55 = arith.constant 9.99999974E-6 : f32
    %88 = vector.broadcast %cst_55 : f32 to vector<1x128xf32>
    %89 = arith.addf %87, %88 : vector<1x128xf32>
    %90 = math.rsqrt %89 : vector<1x128xf32>
    %91 = arith.mulf %64, %90 : vector<1x128xf32>
    %92 = vector.broadcast %91 : vector<1x128xf32> to vector<32x128xf32>
    %93 = arith.mulf %63, %92 : vector<32x128xf32>
    %94 = arith.mulf %82, %91 : vector<1x128xf32>
    %95 = arith.subf %65, %94 : vector<1x128xf32>
    %96 = vector.broadcast %95 : vector<1x128xf32> to vector<32x128xf32>
    %97 = arith.addf %93, %96 : vector<32x128xf32>
    %98 = arith.addf %97, %3 : vector<32x128xf32>
    %cst_56 = arith.constant 0.000000e+00 : f32
    %99 = vector.broadcast %cst_56 : f32 to vector<32x128xf32>
    %100 = arith.maximumf %98, %99 : vector<32x128xf32>
    %c0_57 = arith.constant 0 : index
    %c0_58 = arith.constant 0 : index
    %101 = vector.load %arg3[%c0_57, %c0_58] : memref<32x128xf32, #tpu.memory_space<vmem>>, vector<32x128xf32>
    tpu.vector_store %arg3[%c0_57, %c0_58], %100 {strides = array<i32>} : memref<32x128xf32, #tpu.memory_space<vmem>>, vector<32x128xf32>,
    return
  }
}

</mosaic_0001>

<bundles_post_ra>
// kernel: tpu_custom_call.1
= control target key start
LH: loop header
LB: loop body
LE: loop exit
PB: predicated region body
PF: predicated region fallthrough
CT: control target
= control target key end

     0   :  { %8 = vsyncpa [#allocation4], 0  ;;  %s1643_s0 = inlined_call_operand.hbm [shape: f32[32,128], index: 0, kind: input, shape index: {}]   ;;  %s1644_s1 = inlined_call_operand.hbm [shape: bf16[2,384,128], index: 1, kind: input, shape index: {}]   ;;  %s1645_s2 = inlined_call_operand.hbm [shape: f32[4,128], index: 2, kind: input, shape index: {}]   ;;  %s1646_s3 = inlined_call_operand.hbm [shape: f32[32,128], index: 3, kind: output, shape index: {}]  }
   0x1   :  { %9 = vsyncpa [#allocation7], 0 }
   0x2   :  { %10 = vsyncpa [#allocation5], 0  ;;  %s1459_s12 = smov [#allocation6]  }
   0x3   :  { %s28_s13 = sshll.u32 %s1459_s12, 4  ;;  %s29_s13 = int_to_ptr.vmem [resolvable:$true] %s28_s13 }
   0x4   :  { %s1381_s14 = scalar_lea.vmem %s29_s13, 6144  ;;  %p1386_p1 = scmp.lt.s32.totalorder %s29_s13, %s29_s13 }
   0x5   :  { %p1382_p0 = scmp.ne.s32.totalorder %s29_s13, %s1381_s14  ;;  %p1387_p2 = scmp.lt.s32.totalorder %s1381_s14, %s1381_s14 }
   0x7   :  { %p1388_p3 = por %p1387_p2, %p1386_p1 }
   0x9   :  { %p1389_p4 = pnand %p1388_p3, %p1382_p0 }
   0xb   :  { %1392 = shalt.err (!%p1389_p4)
}
   0xc   :  { %s1460_s15 = smov 64   ;;  %s1461_s16 = smov 4  }
   0xd   :  { %34 = dma.hbm_to_vmem [thread:$0]  %s1644_s1, 6144, %s29_s13, [#allocation7], %s1460_s15, %s1460_s15, %s1461_s16  }
   0xe   :  { %s1462_s19 = smov [#allocation3]  }
   0xf   :  { %s16_s20 = sshll.u32 %s1462_s19, 4  ;;  %s17_s20 = int_to_ptr.vmem [resolvable:$true] %s16_s20 }
  0x10   :  { %s1401_s21 = scalar_lea.vmem %s17_s20, 512  ;;  %p1406_p6 = scmp.lt.s32.totalorder %s17_s20, %s17_s20 }
  0x11   :  { %p1402_p5 = scmp.ne.s32.totalorder %s17_s20, %s1401_s21  ;;  %p1407_p7 = scmp.lt.s32.totalorder %s1401_s21, %s1401_s21 }
  0x13   :  { %p1408_p8 = por %p1407_p7, %p1406_p6 }
  0x15   :  { %p1409_p9 = pnand %p1408_p8, %p1402_p5 }
  0x17   :  { %1412 = shalt.err (!%p1409_p9)
}
  0x18   :  { %s1463_s22 = smov 128   ;;  %s1464_s23 = smov 8  }
  0x19   :  { %22 = dma.hbm_to_vmem [thread:$0]  %s1643_s0, 512, %s17_s20, [#allocation4], %s1463_s22, %s1463_s22, %s1464_s23  }
  0x1a   :  { %s1465_s1 = smov [#allocation8]  }
  0x1b   :  { %s41_s26 = sshll.u32 %s1465_s1, 4  ;;  %s42_s26 = int_to_ptr.vmem [resolvable:$true] %s41_s26 }
  0x1c   :  { %s1421_s27 = scalar_lea.vmem %s42_s26, 64  ;;  %p1426_p11 = scmp.lt.s32.totalorder %s42_s26, %s42_s26 }
  0x1d   :  { %p1422_p10 = scmp.ne.s32.totalorder %s42_s26, %s1421_s27  ;;  %p1427_p12 = scmp.lt.s32.totalorder %s1421_s27, %s1421_s27 }
  0x1f   :  { %p1428_p13 = por %p1427_p12, %p1426_p11 }
  0x21   :  { %p1429_p0 = pnand %p1428_p13, %p1422_p10 }
  0x23   :  { %1432 = shalt.err (!%p1429_p0)
}
  0x24   :  { %44 = dma.hbm_to_vmem [thread:$0]  %s1645_s2, 64, %s42_s26, [#allocation7]  }
  0x25   :  { %1453 = dma.done.wait [#allocation4], 512  }
  0x26   :  { %1454 = vsyncadd [#allocation4], 4294966784 }
  0x27   :  { %1455 = dma.done.wait [#allocation7], 6208  }
  0x28   :  { %1456 = vsyncadd [#allocation7], 4294961088  ;;  %v1306_v0 = vld [vmem:[#allocation6 + $0x78] sm:$0xff]   ;;  %v1309_v3 = vld [vmem:[#allocation6 + $0x70] sm:$0xff]   ;;  %vm56_vm0 = vsmask.f32 256 }
  0x29   :  { %v1307_v1 = vld [vmem:[#allocation6 + $0xb8] sm:$0xff]   ;;  %1180 = vmatprep.subr.bf16.mxu0 %v1306_v0  ;;  %v1310_v4 = vld [vmem:[#allocation6 + $0xb0] sm:$0xff]   ;;  %v1312_v6 = vld [vmem:[#allocation6 + $0x68] sm:$0xff]   ;;  %vm55_vm1 = vcmask 1040384   ;;  %vm65_vm3 = vsmask.f32 7950 }
  0x2a   :  { %v1308_v2 = vld [vmem:[#allocation6 + $0x38] sm:$0xff]   ;;  %1256 = vmatprep.subr.bf16.mxu1 %v1307_v1  ;;  %v1311_v5 = vld [vmem:[#allocation6 + $0x30] sm:$0xff]   ;;  %v1313_v7 = vld [vmem:[#allocation6 + $0xa8] sm:$0xff]   ;;  %vm64_vm4 = vcmask 1043459   ;;  %vm89_vm6 = vsmask.f32 4368 }
  0x2b   :  { %1181 = vmatpush3.bf16.msra.mxu0 %v1308_v2  ;;  %1257 = vmatpush3.bf16.msra.mxu1 %v1307_v1  ;;  %v1314_v8 = vld [vmem:[#allocation6 + $0x28] sm:$0xff]   ;;  %v1315_v9 = vld [vmem:[#allocation6 + $0x60] sm:$0xff]   ;;  %v1318_v12 = vld [vmem:[#allocation6 + $0x58] sm:$0xff]   ;;  %vm128_vm7 = vsmask.f32 7938  ;;  %vm127_vm10 = vcmask 1043456  }
  0x2c   :  { %1182 = vmatprep.subr.bf16.mxu0 %v1309_v3  ;;  %1258 = vmatprep.subr.bf16.mxu1 %v1310_v4  ;;  %v1316_v10 = vld [vmem:[#allocation6 + $0xa0] sm:$0xff]   ;;  %v1319_v13 = vld [vmem:[#allocation6 + $0x98] sm:$0xff]   ;;  %vm1505_vm2 = vmand %vm55_vm1, %vm56_vm0  ;;  %vm146_vm8 = vsmask.f32 3328  ;;  %vm147_vm9 = vsmask.f32 7440 }
  0x2d   :  { %v1317_v11 = vld [vmem:[#allocation6 + $0x20] sm:$0xff]   ;;  %v1320_v15 = vld [vmem:[#allocation6 + $0x18] sm:$0xff]   ;;  %v1321_v16 = vld [vmem:[#allocation6 + $0x50] sm:$0xff]   ;;  %s1466_s0 = smov 16   ;;  %s1467_s2 = smov 32  }
  0x2e   :  { %v1322_v17 = vld [vmem:[#allocation6 + $0x90] sm:$0xff]   ;;  %vm1509_vm5 = vmand %vm64_vm4, %vm65_vm3  ;;  %v1324_v20 = vld [vmem:[#allocation6 + $0x48] sm:$0xff]   ;;  %s1468_s30 = smov [#allocation9]  }
  0x2f   :  { %1183 = vmatpush3.bf16.msra.mxu0 %v1311_v5  ;;  %1259 = vmatpush3.bf16.msra.mxu1 %v1310_v4  ;;  %v1323_v19 = vld [vmem:[#allocation6 + $0x10] sm:$0xff]   ;;  %v1325_v21 = vld [vmem:[#allocation6 + $0x88] sm:$0xff]   ;;  %v1327_v23 = vld [vmem:[#allocation6 + $0x40] sm:$0xff]   ;;  %s1091_s4 = sshll.u32 %s1468_s30, 4  ;;  %s1092_s4 = int_to_ptr.vmem [resolvable:$true] %s1091_s4 }
  0x30   :  { %1184 = vmatprep.subr.bf16.mxu0 %v1312_v6  ;;  %1260 = vmatprep.subr.bf16.mxu1 %v1313_v7  ;;  %v1326_v22 = vld [vmem:[#allocation6 + $0x8] sm:$0xff]   ;;  %v1328_v24 = vld [vmem:[#allocation6 + $0x80] sm:$0xff]   ;;  %v58_v25 = vld [vmem:[#allocation2] sm:$0x1]  ;;  %s1433_s5 = scalar_lea.vmem %s1092_s4, 512  ;;  %p1438_p2 = scmp.lt.s32.totalorder %s1092_s4, %s1092_s4 }
  0x31   :  { %v61_v26 = vld [vmem:[#allocation2 + $0x18] sm:$0x1]  ;;  %v1513_v27 = vld [vmem:[#allocation3] sm:$0xff]  ;;  %v59_v28 = vsel %vm1505_vm2, 0, %v58_v25  ;;  %v1523_v33 = vld [vmem:[#allocation3 + $0x10] sm:$0xff]  ;;  %p1434_p1 = scmp.ne.s32.totalorder %s1092_s4, %s1433_s5  ;;  %p1439_p3 = scmp.lt.s32.totalorder %s1433_s5, %s1433_s5 }
  0x32   :  { %v62_v29 = vsel %vm1505_vm2, 0, %v61_v26  ;;  %v1519_v30 = vld [vmem:[#allocation3 + $0x8] sm:$0xff]  ;;  %v1172_v31 = vpack.c.bf16 %v1513_v27, %v1513_v27  ;;  %v67_v32 = vld [vmem:[#allocation2 + $0x14] sm:$0x8]  ;;  %60 = vst [vmem:[#allocation2] sm:$0x1] %v59_v28  ;;  %v1174_v38 = vpack.c.bf16 %v1523_v33, %v1523_v33  ;;  %vm1539_vm11 = vmor %vm56_vm0, %vm89_vm6 }
  0x33   :  { %1185 = vmatpush3.bf16.msra.mxu0 %v1314_v8  ;;  %1261 = vmatpush3.bf16.msra.mxu1 %v1313_v7  ;;  %v1173_v34 = vpack.c.bf16 %v1519_v30, %v1519_v30  ;;  %63 = vst [vmem:[#allocation2 + $0x18] sm:$0x1] %v62_v29  ;;  %v68_v35 = vsel %vm1509_vm5, 0, %v67_v32  ;;  %v70_v36 = vld [vmem:[#allocation2 + $0x2c] sm:$0x8]  ;;  %v1329_v39 = vld [vmem:[#allocation6] sm:$0xff]   ;;  %vm1545_vm12 = vmand %vm127_vm10, %vm128_vm7  ;;  %p1440_p4 = por %p1439_p3, %p1438_p2 }
  0x34   :  { %1186 = vmatprep.subr.bf16.mxu0 %v1315_v9  ;;  %1262 = vmatprep.subr.bf16.mxu1 %v1316_v10  ;;  %v1529_v37 = vld [vmem:[#allocation3 + $0x18] sm:$0xff]  ;;  %v92_v40 = vshrl.u32 %v1172_v31, 16  ;;  %v95_v41 = vshll.u32 %v1172_v31, 16  ;;  %142 = vst [vmem:[#allocation2 + $0x4] sm:$0xf] %v1172_v31  ;;  %v71_v42 = vsel %vm1509_vm5, 0, %v70_v36  ;;  %vm1551_vm13 = vmor %vm146_vm8, %vm147_vm9 }
  0x35   :  { %69 = vst [vmem:[#allocation2 + $0x14] sm:$0x8] %v68_v35  ;;  %v1175_v43 = vpack.c.bf16 %v1529_v37, %v1529_v37  ;;  %v100_v44 = vshrl.u32 %v1173_v34, 16  ;;  %v103_v45 = vshll.u32 %v1173_v34, 16  ;;  %143 = vst [vmem:[#allocation2 + $0x10] sm:$0xf] %v1173_v34  ;;  %p1441_p5 = pnand %p1440_p4, %p1434_p1 }
  0x36   :  { %72 = vst [vmem:[#allocation2 + $0x2c] sm:$0x8] %v71_v42  ;;  %v108_v46 = vshrl.u32 %v1174_v38, 16  ;;  %v111_v47 = vshll.u32 %v1174_v38, 16  ;;  %144 = vst [vmem:[#allocation2 + $0x1c] sm:$0xf] %v1174_v38 }
  0x37   :  { %1187 = vmatpush3.bf16.msra.mxu0 %v1317_v11  ;;  %1263 = vmatpush3.bf16.msra.mxu1 %v1316_v10  ;;  %v94_v48 = vrot.slane %v92_v40, 7  ;;  %v149_v49 = vrot.slane %v92_v40, 4  ;;  %v150_v50 = vrot.slane %v95_v41, 5  ;;  %v116_v51 = vshrl.u32 %v1175_v43, 16  ;;  %145 = vst [vmem:[#allocation2 + $0x28] sm:$0xf] %v1175_v43  ;;  %vm1557_vm14 = vmand %vm127_vm10, %vm146_vm8 }
  0x38   :  { %1188 = vmatprep.subr.bf16.mxu0 %v1318_v12  ;;  %1264 = vmatprep.subr.bf16.mxu1 %v1319_v13  ;;  %v102_v53 = vrot.slane %v100_v44, 7  ;;  %v153_v54 = vrot.slane %v103_v45, 5  ;;  %v155_v55 = vrot.slane %v100_v44, 4  ;;  %v119_v56 = vshll.u32 %v1175_v43, 16 }
  0x39   :  { %v97_v57 = vor.u32 %v95_v41, %v94_v48  ;;  %v98_v58 = vrot.slane %v94_v48, 4  ;;  %v151_v60 = vor.u32 %v150_v50, %v149_v49  ;;  %v158_v61 = vrot.slane %v108_v46, 4  ;;  %v130_v3 = vld [vmem:[#allocation2] sm:$0xf] }
  0x3a   :  { %v105_v62 = vor.u32 %v103_v45, %v102_v53  ;;  %v156_v0 = vor.u32 %v155_v55, %v153_v54  ;;  %v159_v1 = vrot.slane %v111_v47, 5  ;;  %v162_v2 = vrot.slane %v119_v56, 5  ;;  %v134_v14 = vld [vmem:[#allocation2 + $0x18] sm:$0xf] }
  0x3b   :  { %1189 = vmatpush3.bf16.msra.mxu0 %v1320_v15  ;;  %1265 = vmatpush3.bf16.msra.mxu1 %v1319_v13  ;;  %v152_v4 = vrot.slane %v151_v60, 4  ;;  %v164_v6 = vrot.slane %v116_v51, 4  ;;  %v110_v7 = vrot.slane %v108_v46, 7  ;;  %v118_v8 = vrot.slane %v116_v51, 7 }
  0x3c   :  { %1190 = vmatprep.subr.bf16.mxu0 %v1321_v16  ;;  %1266 = vmatprep.subr.bf16.mxu1 %v1322_v17  ;;  %v106_v9 = vsel %vm1539_vm11, %v98_v58, %v105_v62  ;;  %v131_v10 = vsel %vm1545_vm12, %v97_v57, %v130_v3  ;;  %v157_v11 = vrot.slane %v156_v0, 4  ;;  %v173_v12 = vld [vmem:[#allocation2 + $0x14] sm:$0xf]  ;;  %v160_v13 = vor.u32 %v159_v1, %v158_v61  ;;  %v1330_v32 = vld [vmem:[#allocation2 + $0x4] ss:$12 sps:$4 sm:$0xff]  }
  0x3d   :  { %132 = vst [vmem:[#allocation2] sm:$0xf] %v131_v10  ;;  %133 = vst [vmem:[#allocation2 + $0xc] sm:$0xf] %v106_v9  ;;  %v154_v15 = vsel %vm1551_vm13, %v152_v4, %v153_v54  ;;  %v165_v16 = vor.u32 %v164_v6, %v162_v2  ;;  %v113_v18 = vor.u32 %v111_v47, %v110_v7  ;;  %444 = vmatprep.mubr.bf16.mxu0 %v1330_v32  ;;  %v1338_v32 = vld [vmem:[#allocation6 + $0xf8] sm:$0xff]  }
  0x3e   :  { %171 = vst [vmem:[#allocation2 + $0x8] sm:$0xf] %v154_v15  ;;  %v1334_v36 = vld [vmem:[#allocation2 + $0x1c] ss:$12 sps:$4 sm:$0xff]  }
  0x3f   :  { %1191 = vmatpush3.bf16.msra.mxu0 %v1323_v19  ;;  %1267 = vmatpush3.bf16.msra.mxu1 %v1322_v17  ;;  %v177_v17 = vld [vmem:[#allocation2 + $0x2c] sm:$0xf]  ;;  %v114_v19 = vrot.slane %v110_v7, 4 }
  0x40   :  { %1192 = vmatprep.subr.bf16.mxu0 %v1324_v20  ;;  %1268 = vmatprep.subr.bf16.mxu1 %v1325_v21  ;;  %v174_v20 = vsel %vm1557_vm14, %v157_v11, %v173_v12 }
  0x41   :  { %175 = vst [vmem:[#allocation2 + $0x14] sm:$0xf] %v174_v20 }
  0x43   :  { %1193 = vmatpush3.bf16.msra.mxu0 %v1326_v22  ;;  %1269 = vmatpush3.bf16.msra.mxu1 %v1325_v21  ;;  %v161_v21 = vrot.slane %v160_v13, 4  ;;  %v121_v22 = vor.u32 %v119_v56, %v118_v8 }
  0x44   :  { %1194 = vmatprep.subr.bf16.mxu0 %v1327_v23  ;;  %1270 = vmatprep.subr.bf16.mxu1 %v1328_v24  ;;  %v166_v23 = vrot.slane %v165_v16, 4  ;;  %v180_v29 = vld [vmem:[#allocation2] sm:$0xff]  ;;  %v182_v31 = vld [vmem:[#allocation2 + $0xc] sm:$0xff] }
  0x45   :  { %v163_v25 = vsel %vm1551_vm13, %v161_v21, %v162_v2  ;;  %v122_v26 = vsel %vm1539_vm11, %v114_v19, %v121_v22  ;;  %v1108_v34 = vcombine.low %v180_v29, %v182_v31  ;;  %v1337_v31 = vld [vmem:[#allocation6 + $0x138] sm:$0xff]  }
  0x46   :  { %176 = vst [vmem:[#allocation2 + $0x20] sm:$0xf] %v163_v25  ;;  %v178_v28 = vsel %vm1557_vm14, %v166_v23, %v177_v17  ;;  %137 = vst [vmem:[#allocation2 + $0x24] sm:$0xf] %v122_v26 }
  0x47   :  { %1195 = vmatpush3.bf16.msra.mxu0 %v1329_v39  ;;  %1271 = vmatpush3.bf16.msra.mxu1 %v1328_v24  ;;  %v135_v24 = vsel %vm1545_vm12, %v113_v18, %v134_v14  ;;  %179 = vst [vmem:[#allocation2 + $0x2c] sm:$0xf] %v178_v28 }
  0x48   :  { %136 = vst [vmem:[#allocation2 + $0x18] sm:$0xf] %v135_v24  ;;  %v1332_v35 = vld [vmem:[#allocation2 + $0x8] ss:$12 sps:$4 sm:$0xff]   ;;  %1218 = vmatprep.subr.bf16.mxu0 %v1337_v31 }
  0x49   :  { %1272 = vmatprep.mubr.bf16.mxu1 %v1332_v35  ;;  %v1340_v35 = vld [vmem:[#allocation6 + $0x130] sm:$0xff]  }
  0x4a   :  { %445 = vmatmul.mubr.bf16.vlgmr.msra.gmra.mxu0 %v1108_v34  ;;  %v1339_v34 = vld [vmem:[#allocation6 + $0x178] sm:$0xff]  }
  0x4b   :  { %452 = vmatprep.mubr.bf16.mxu0 %v1334_v36  ;;  %1219 = vmatpush3.bf16.msra.mxu0 %v1338_v32  ;;  %v1341_v36 = vld [vmem:[#allocation6 + $0xf0] sm:$0xff]  }
  0x4c   :  { %1276 = vmatprep.subr.bf16.mxu1 %v1339_v34  ;;  %1220 = vmatprep.subr.bf16.mxu0 %v1340_v35 }
  0x4e   :  { %v1333_v38 = vld [vmem:[#allocation2 + $0x20] ss:$12 sps:$4 sm:$0xff]  }
  0x4f   :  { %v1336_v39 = vld [vmem:[#allocation2 + $0x18] ss:$12 sps:$4 sm:$0xff]   ;;  %1273 = vmatmul.mubr.bf16.vlgmr.msra.gmra.mxu1 %v1333_v38  ;;  %1221 = vmatpush3.bf16.msra.mxu0 %v1341_v36 }
  0x50   :  { %1277 = vmatpush3.bf16.msra.mxu1 %v1339_v34  ;;  %v1342_v38 = vld [vmem:[#allocation6 + $0x170] sm:$0xff]  }
  0x51   :  { %1278 = vmatprep.subr.bf16.mxu1 %v1342_v38 }
  0x52   :  { %453 = vmatmul.mubr.bf16.gmra.mxu0 %v1336_v39  ;;  %v1343_v39 = vld [vmem:[#allocation6 + $0x128] sm:$0xff]  }
  0x53   :  { %1222 = vmatprep.subr.bf16.mxu0 %v1343_v39 }
  0x54   :  { %1279 = vmatpush3.bf16.msra.mxu1 %v1342_v38 }
 0x10a   :  { %v1196_v40 = vpop.f32.mrf.mxu0 }
 0x10c   :  { %v1197_v41 = vpop.f32.mrf.mxu0 }
 0x10d   :  { %v1198_v46 = vadd.f32 %v1197_v41, %v1196_v40  ;;  %v1344_v40 = vld [vmem:[#allocation6 + $0xe8] sm:$0xff]  }
 0x10e   :  { %v1199_v43 = vpop.f32.mrf.mxu0  ;;  %v1345_v41 = vld [vmem:[#allocation6 + $0x168] sm:$0xff]   ;;  %1223 = vmatpush3.bf16.msra.mxu0 %v1344_v40 }
 0x10f   :  { %v1274_v42 = vpop.f32.mrf.mxu1  ;;  %1280 = vmatprep.subr.bf16.mxu1 %v1345_v41 }
 0x110   :  { %v1200_v45 = vpop.f32.mrf.mxu0  ;;  %1281 = vmatpush3.bf16.msra.mxu1 %v1345_v41 }
 0x111   :  { %v495_v44 = vpop.f32.mrf.mxu1  ;;  %v1201_v47 = vadd.f32 %v1200_v45, %v1199_v43  ;;  %v1347_v43 = vld [vmem:[#allocation6 + $0xe0] sm:$0xff]   ;;  %v1349_v45 = vld [vmem:[#allocation6 + $0x118] sm:$0xff]  }
 0x112   :  { %v1202_v49 = vpop.f32.mrf.mxu0  ;;  %v1577_v53 = vadd.f32 %v1198_v46, %v495_v44  ;;  %v1348_v44 = vld [vmem:[#allocation6 + $0x160] sm:$0xff]   ;;  %v1350_v46 = vld [vmem:[#allocation6 + $0xd8] sm:$0xff]  }
 0x113   :  { %v1275_v48 = vpop.f32.mrf.mxu1  ;;  %1282 = vmatprep.subr.bf16.mxu1 %v1348_v44 }
 0x114   :  { %v1203_v51 = vpop.f32.mrf.mxu0  ;;  %v521_v61 = vmul.f32 %v1577_v53, %v1577_v53  ;;  %1283 = vmatpush3.bf16.msra.mxu1 %v1348_v44 }
 0x115   :  { %v498_v50 = vpop.f32.mrf.mxu1  ;;  %v1204_v55 = vadd.f32 %v1203_v51, %v1202_v49  ;;  %v1353_v49 = vld [vmem:[#allocation6 + $0xd0] sm:$0xff]   ;;  %v1355_v51 = vld [vmem:[#allocation6 + $0x108] sm:$0xff]  }
 0x116   :  { %v1579_v54 = vadd.f32 %v1201_v47, %v498_v50  ;;  %v1205_v56 = vpop.f32.mrf.mxu0  ;;  %v1351_v47 = vld [vmem:[#allocation6 + $0x158] sm:$0xff]   ;;  %v1354_v50 = vld [vmem:[#allocation6 + $0x150] sm:$0xff]  }
 0x117   :  { %v1583_v58 = vadd.f32 %v1274_v42, %v1204_v55  ;;  %v1346_v42 = vld [vmem:[#allocation6 + $0x120] sm:$0xff]   ;;  %1284 = vmatprep.subr.bf16.mxu1 %v1351_v47  ;;  %v1356_v55 = vld [vmem:[#allocation6 + $0xc8] sm:$0xff]  }
 0x118   :  { %v522_v57 = vmul.f32 %v1579_v54, %v1579_v54  ;;  %v1206_v60 = vpop.f32.mrf.mxu0  ;;  %v512_v62 = vadd.f32 %v1579_v54, %v1577_v53  ;;  %1224 = vmatprep.subr.bf16.mxu0 %v1346_v42  ;;  %1285 = vmatpush3.bf16.msra.mxu1 %v1351_v47 }
 0x119   :  { %v523_v0 = vmul.f32 %v1583_v58, %v1583_v58  ;;  %v1207_v1 = vadd.f32 %v1206_v60, %v1205_v56  ;;  %1225 = vmatpush3.bf16.msra.mxu0 %v1347_v43  ;;  %1286 = vmatprep.subr.bf16.mxu1 %v1354_v50  ;;  %v1357_v56 = vld [vmem:[#allocation6 + $0x148] sm:$0xff]   ;;  %v1359_v60 = vld [vmem:[#allocation6 + $0xc0] sm:$0xff]  }
 0x11a   :  { %v525_v2 = vadd.f32 %v522_v57, %v521_v61  ;;  %v513_v3 = vadd.f32 %v512_v62, %v1583_v58  ;;  %1226 = vmatprep.subr.bf16.mxu0 %v1349_v45  ;;  %v1358_v57 = vld [vmem:[#allocation6 + $0x100] sm:$0xff]  }
 0x11b   :  { %v1592_v4 = vadd.f32 %v1275_v48, %v1207_v1  ;;  %v1352_v48 = vld [vmem:[#allocation6 + $0x110] sm:$0xff]   ;;  %v1360_v61 = vld [vmem:[#allocation6 + $0x140] sm:$0xff]  }
 0x11c   :  { %v526_v6 = vadd.f32 %v525_v2, %v523_v0  ;;  %1287 = vmatpush3.bf16.msra.mxu1 %v1354_v50 }
 0x11d   :  { %v514_v7 = vadd.f32 %v513_v3, %v1592_v4  ;;  %v524_v8 = vmul.f32 %v1592_v4, %v1592_v4  ;;  %1227 = vmatpush3.bf16.msra.mxu0 %v1350_v46  ;;  %1288 = vmatprep.subr.bf16.mxu1 %v1357_v56 }
 0x11e   :  { %1228 = vmatprep.subr.bf16.mxu0 %v1352_v48  ;;  %v630_v48 = vld [vmem:[#allocation2] sm:$0xf] }
 0x11f   :  { %v515_v9 = vrot.slane %v514_v7, 4  ;;  %v527_v10 = vadd.f32 %v526_v6, %v524_v8  ;;  %v560_v8 = vlaneseq }
 0x120   :  { %1289 = vmatpush3.bf16.msra.mxu1 %v1357_v56  ;;  %v634_v56 = vld [vmem:[#allocation2 + $0x18] sm:$0xf] }
 0x121   :  { %v516_v11 = vadd.f32 %v515_v9, %v514_v7  ;;  %v528_v12 = vrot.slane %v527_v10, 4  ;;  %1229 = vmatpush3.bf16.msra.mxu0 %v1353_v49  ;;  %1290 = vmatprep.subr.bf16.mxu1 %v1360_v61  ;;  %v561_v9 = vshrl.u32 %v560_v8, 7 }
 0x122   :  { %1230 = vmatprep.subr.bf16.mxu0 %v1355_v51 }
 0x123   :  { %v517_v13 = vrot.slane %v516_v11, 2  ;;  %v529_v14 = vadd.f32 %v528_v12, %v527_v10  ;;  %v1602_v12 = vsub.s32 0, %v561_v9 }
 0x124   :  { %1291 = vmatpush3.bf16.msra.mxu1 %v1360_v61 }
 0x125   :  { %v518_v15 = vadd.f32 %v517_v13, %v516_v11  ;;  %v530_v16 = vrot.slane %v529_v14, 2  ;;  %1231 = vmatpush3.bf16.msra.mxu0 %v1356_v55  ;;  %v510_v11 = vld [vmem:[#allocation8] sm:$0x1] }
 0x126   :  { %1232 = vmatprep.subr.bf16.mxu0 %v1358_v57 }
 0x127   :  { %v519_v17 = vrot.slane %v518_v15, 1  ;;  %v531_v18 = vadd.f32 %v530_v16, %v529_v14 }
 0x129   :  { %v532_v19 = vrot.slane %v531_v18, 1  ;;  %v520_v20 = vadd.f32 %v519_v17, %v518_v15  ;;  %1233 = vmatpush3.bf16.msra.mxu0 %v1359_v60  ;;  %v511_v15 = vld [vmem:[#allocation8 + $0x1] sm:$0x1] }
 0x12b   :  { %v533_v21 = vadd.f32 %v532_v19, %v531_v18 }
 0x12d   :  { %v535_v22 = vsel %vm55_vm1, %v520_v20, %v533_v21 }
 0x12e   :  { %536 = vrot.lane.b32.xlu0 %v535_v22, %s1464_s23 }
 0x1a0   :  { %v537_v23 = vpop.permute.xlu0 %536 }
 0x1a1   :  { %v538_v24 = vadd.f32 %v537_v23, %v535_v22 }
 0x1a3   :  { %539 = vrot.lane.b32.xlu0 %v538_v24, %s1466_s0 }
 0x215   :  { %v540_v25 = vpop.permute.xlu0 %539 }
 0x216   :  { %v541_v26 = vadd.f32 %v540_v25, %v538_v24 }
 0x218   :  { %542 = vrot.lane.b32.xlu1 %v541_v26, %s1467_s2 }
 0x28a   :  { %v543_v28 = vpop.permute.xlu1 %542 }
 0x28b   :  { %v544_v29 = vadd.f32 %v543_v28, %v541_v26 }
 0x28d   :  { %545 = vrot.lane.b32.xlu1 %v544_v29, %s1460_s15 }
 0x2ff   :  { %v546_v62 = vpop.permute.xlu1 %545 }
 0x300   :  { %v547_v0 = vadd.f32 %v546_v62, %v544_v29 }
 0x302   :  { %v548_v1 = vmul.f32 0.001953125, %v547_v0 }
 0x304   :  { %v549_v2 = vmul.f32 %v548_v1, %v548_v1 }
 0x306   :  { %v551_v3 = vrot.slane %v549_v2, 7 }
 0x308   :  { %v553_v6 = vsub.f32 %v548_v1, %v551_v3 }
 0x30a   :  { %v554_v7 = vadd.f32 1e-05, %v553_v6  ;;  %v669_v6 = vld [vmem:[#allocation2 + $0x14] sm:$0xf] }
 0x30c   :  { %1369 = vrsqrt.f32 %v554_v7 }
 0x319   :  { %v1370_v10 = vpop.eup %1369 }
 0x31a   :  { %v557_v13 = vrot.slane %v1370_v10, 1 }
 0x31c   :  { %v559_v14 = vmul.f32 %v557_v13, %v510_v11 }
 0x31e   :  { %v563_v16 = vrot.slane %v559_v14, %v1602_v12  ;;  %v568_v17 = vmul.f32 %v559_v14, %v548_v1 }
 0x320   :  { %v569_v18 = vsub.f32 %v511_v15, %v568_v17  ;;  %v564_v19 = vmul.f32 %v563_v16, %v1577_v53  ;;  %v565_v20 = vmul.f32 %v563_v16, %v1579_v54  ;;  %v566_v21 = vmul.f32 %v563_v16, %v1583_v58 }
 0x321   :  { %v567_v22 = vmul.f32 %v563_v16, %v1592_v4 }
 0x322   :  { %v573_v23 = vrot.slane %v569_v18, %v1602_v12 }
 0x324   :  { %v574_v24 = vadd.f32 %v573_v23, %v564_v19  ;;  %v575_v25 = vadd.f32 %v573_v23, %v565_v20  ;;  %v576_v26 = vadd.f32 %v573_v23, %v566_v21  ;;  %v577_v28 = vadd.f32 %v573_v23, %v567_v22  ;;  %v673_v21 = vld [vmem:[#allocation2 + $0x2c] sm:$0xf] }
 0x326   :  { %v578_v29 = vmax.f32 %v574_v24, 0.0  ;;  %v579_v31 = vmax.f32 %v575_v25, 0.0  ;;  %v580_v32 = vmax.f32 %v576_v26, 0.0  ;;  %v581_v34 = vmax.f32 %v577_v28, 0.0 }
 0x328   :  { %v1176_v35 = vpack.c.bf16 %v578_v29, %v578_v29  ;;  %v1177_v36 = vpack.c.bf16 %v579_v31, %v579_v31  ;;  %v1178_v38 = vpack.c.bf16 %v580_v32, %v580_v32  ;;  %v1179_v53 = vpack.c.bf16 %v581_v34, %v581_v34 }
 0x32a   :  { %v595_v39 = vshrl.u32 %v1176_v35, 16  ;;  %v598_v54 = vshll.u32 %v1176_v35, 16  ;;  %v603_v40 = vshrl.u32 %v1177_v36, 16  ;;  %v606_v58 = vshll.u32 %v1177_v36, 16  ;;  %642 = vst [vmem:[#allocation2 + $0x4] sm:$0xf] %v1176_v35 }
 0x32b   :  { %643 = vst [vmem:[#allocation2 + $0x10] sm:$0xf] %v1177_v36  ;;  %644 = vst [vmem:[#allocation2 + $0x1c] sm:$0xf] %v1178_v38  ;;  %v611_v4 = vshrl.u32 %v1178_v38, 16  ;;  %v614_v41 = vshll.u32 %v1178_v38, 16 }
 0x32c   :  { %645 = vst [vmem:[#allocation2 + $0x28] sm:$0xf] %v1179_v53  ;;  %v619_v42 = vshrl.u32 %v1179_v53, 16  ;;  %v622_v43 = vshll.u32 %v1179_v53, 16  ;;  %v597_v44 = vrot.slane %v595_v39, 7  ;;  %v605_v45 = vrot.slane %v603_v40, 7 }
 0x32d   :  { %v646_v46 = vrot.slane %v595_v39, 4  ;;  %v647_v47 = vrot.slane %v598_v54, 5  ;;  %v613_v49 = vrot.slane %v611_v4, 7  ;;  %v650_v51 = vrot.slane %v606_v58, 5 }
 0x32e   :  { %v621_v50 = vrot.slane %v619_v42, 7  ;;  %v652_v55 = vrot.slane %v603_v40, 4  ;;  %v600_v57 = vor.u32 %v598_v54, %v597_v44  ;;  %v601_v60 = vrot.slane %v597_v44, 4 }
 0x32f   :  { %v608_v61 = vor.u32 %v606_v58, %v605_v45  ;;  %v648_v62 = vor.u32 %v647_v47, %v646_v46  ;;  %v616_v0 = vor.u32 %v614_v41, %v613_v49  ;;  %v617_v1 = vrot.slane %v613_v49, 4 }
 0x330   :  { %v624_v2 = vor.u32 %v622_v43, %v621_v50  ;;  %v653_v3 = vor.u32 %v652_v55, %v650_v51  ;;  %v631_v8 = vsel %vm1545_vm12, %v600_v57, %v630_v48  ;;  %v655_v10 = vrot.slane %v611_v4, 4 }
 0x331   :  { %v609_v7 = vsel %vm1539_vm11, %v601_v60, %v608_v61  ;;  %v649_v9 = vrot.slane %v648_v62, 4  ;;  %v635_v13 = vsel %vm1545_vm12, %v616_v0, %v634_v56  ;;  %v656_v15 = vrot.slane %v614_v41, 5  ;;  %632 = vst [vmem:[#allocation2] sm:$0xf] %v631_v8 }
 0x332   :  { %v625_v11 = vsel %vm1539_vm11, %v617_v1, %v624_v2  ;;  %633 = vst [vmem:[#allocation2 + $0xc] sm:$0xf] %v609_v7  ;;  %v654_v14 = vrot.slane %v653_v3, 4  ;;  %v659_v17 = vrot.slane %v622_v43, 5  ;;  %v661_v18 = vrot.slane %v619_v42, 4 }
 0x333   :  { %637 = vst [vmem:[#allocation2 + $0x24] sm:$0xf] %v625_v11  ;;  %v651_v16 = vsel %vm1551_vm13, %v649_v9, %v650_v51  ;;  %636 = vst [vmem:[#allocation2 + $0x18] sm:$0xf] %v635_v13  ;;  %v657_v19 = vor.u32 %v656_v15, %v655_v10  ;;  %v1363_v26 = vld [vmem:[#allocation2 + $0x4] ss:$12 sps:$4 sm:$0xff]  }
 0x334   :  { %668 = vst [vmem:[#allocation2 + $0x8] sm:$0xf] %v651_v16  ;;  %v670_v52 = vsel %vm1557_vm14, %v654_v14, %v669_v6  ;;  %v662_v20 = vor.u32 %v661_v18, %v659_v17  ;;  %941 = vmatprep.mubr.bf16.mxu0 %v1363_v26  ;;  %v1364_v28 = vld [vmem:[#allocation2 + $0x1c] ss:$12 sps:$4 sm:$0xff]  }
 0x335   :  { %671 = vst [vmem:[#allocation2 + $0x14] sm:$0xf] %v670_v52  ;;  %v658_v59 = vrot.slane %v657_v19, 4 }
 0x336   :  { %v663_v22 = vrot.slane %v662_v20, 4 }
 0x337   :  { %v660_v23 = vsel %vm1551_vm13, %v658_v59, %v659_v17 }
 0x338   :  { %672 = vst [vmem:[#allocation2 + $0x20] sm:$0xf] %v660_v23  ;;  %v674_v24 = vsel %vm1557_vm14, %v663_v22, %v673_v21 }
 0x339   :  { %v1361_v25 = vld [vmem:[#allocation2] ss:$12 sps:$4 sm:$0xff]   ;;  %675 = vst [vmem:[#allocation2 + $0x2c] sm:$0xf] %v674_v24 }
 0x33a   :  { %942 = vmatmul.mubr.bf16.vlgmr.msra.gmra.mxu0 %v1361_v25  ;;  %v1368_v32 = vld [vmem:[#allocation2 + $0x18] ss:$12 sps:$4 sm:$0xff]  }
 0x33b   :  { %949 = vmatprep.mubr.bf16.mxu0 %v1364_v28 }
 0x33c   :  { %v1366_v29 = vld [vmem:[#allocation2 + $0x8] ss:$12 sps:$4 sm:$0xff]  }
 0x33d   :  { %1292 = vmatprep.mubr.bf16.mxu1 %v1366_v29 }
 0x340   :  { %v1367_v31 = vld [vmem:[#allocation2 + $0x20] ss:$12 sps:$4 sm:$0xff]  }
 0x341   :  { %1293 = vmatmul.mubr.bf16.vlgmr.msra.gmra.mxu1 %v1367_v31  ;;  %v1007_v31 = vld [vmem:[#allocation8 + $0x2] sm:$0x1] }
 0x342   :  { %950 = vmatmul.mubr.bf16.gmra.mxu0 %v1368_v32 }
 0x3fa   :  { %v1234_v34 = vpop.f32.mrf.mxu0 }
 0x3fc   :  { %v1235_v63 = vpop.f32.mrf.mxu0 }
 0x3fd   :  { %v1236_v36 = vadd.f32 %v1235_v63, %v1234_v34  ;;  %v1008_v63 = vld [vmem:[#allocation8 + $0x3] sm:$0x1] }
 0x3fe   :  { %v1237_v35 = vpop.f32.mrf.mxu0 }
 0x400   :  { %v1238_v5 = vpop.f32.mrf.mxu0 }
 0x401   :  { %v1294_v38 = vpop.f32.mrf.mxu1  ;;  %v1239_v54 = vadd.f32 %v1238_v5, %v1237_v35 }
 0x402   :  { %v1240_v39 = vpop.f32.mrf.mxu0 }
 0x403   :  { %v992_v53 = vpop.f32.mrf.mxu1 }
 0x404   :  { %v993_v40 = vadd.f32 %v1236_v36, %v992_v53  ;;  %v1241_v4 = vpop.f32.mrf.mxu0 }
 0x405   :  { %v1295_v58 = vpop.f32.mrf.mxu1  ;;  %v1242_v41 = vadd.f32 %v1241_v4, %v1240_v39 }
 0x406   :  { %v1243_v43 = vpop.f32.mrf.mxu0  ;;  %v1018_v46 = vmul.f32 %v993_v40, %v993_v40 }
 0x407   :  { %v995_v42 = vpop.f32.mrf.mxu1  ;;  %v1001_v45 = vadd.f32 %v1294_v38, %v1242_v41 }
 0x408   :  { %v996_v44 = vadd.f32 %v1239_v54, %v995_v42  ;;  %v1244_v47 = vpop.f32.mrf.mxu0 }
 0x409   :  { %v1020_v50 = vmul.f32 %v1001_v45, %v1001_v45  ;;  %v1245_v51 = vadd.f32 %v1244_v47, %v1243_v43 }
 0x40a   :  { %v1009_v48 = vadd.f32 %v996_v44, %v993_v40  ;;  %v1019_v49 = vmul.f32 %v996_v44, %v996_v44 }
 0x40b   :  { %v1004_v57 = vadd.f32 %v1295_v58, %v1245_v51 }
 0x40c   :  { %v1022_v55 = vadd.f32 %v1019_v49, %v1018_v46  ;;  %v1010_v56 = vadd.f32 %v1009_v48, %v1001_v45 }
 0x40d   :  { %v1021_v62 = vmul.f32 %v1004_v57, %v1004_v57 }
 0x40e   :  { %v1023_v60 = vadd.f32 %v1022_v55, %v1020_v50  ;;  %v1011_v61 = vadd.f32 %v1010_v56, %v1004_v57 }
 0x410   :  { %v1012_v0 = vrot.slane %v1011_v61, 4  ;;  %v1024_v1 = vadd.f32 %v1023_v60, %v1021_v62 }
 0x412   :  { %v1013_v2 = vadd.f32 %v1012_v0, %v1011_v61  ;;  %v1025_v3 = vrot.slane %v1024_v1, 4 }
 0x414   :  { %v1014_v6 = vrot.slane %v1013_v2, 2  ;;  %v1026_v7 = vadd.f32 %v1025_v3, %v1024_v1 }
 0x416   :  { %v1015_v8 = vadd.f32 %v1014_v6, %v1013_v2  ;;  %v1027_v9 = vrot.slane %v1026_v7, 2 }
 0x418   :  { %v1016_v10 = vrot.slane %v1015_v8, 1  ;;  %v1028_v11 = vadd.f32 %v1027_v9, %v1026_v7 }
 0x41a   :  { %v1029_v13 = vrot.slane %v1028_v11, 1  ;;  %v1017_v14 = vadd.f32 %v1016_v10, %v1015_v8 }
 0x41c   :  { %v1030_v15 = vadd.f32 %v1029_v13, %v1028_v11 }
 0x41e   :  { %v1031_v16 = vsel %vm55_vm1, %v1017_v14, %v1030_v15 }
 0x41f   :  { %1032 = vrot.lane.b32.xlu0 %v1031_v16, %s1464_s23 }
 0x491   :  { %v1033_v17 = vpop.permute.xlu0 %1032 }
 0x492   :  { %v1034_v18 = vadd.f32 %v1033_v17, %v1031_v16 }
 0x494   :  { %1035 = vrot.lane.b32.xlu1 %v1034_v18, %s1466_s0 }
 0x506   :  { %v1036_v19 = vpop.permute.xlu1 %1035 }
 0x507   :  { %v1037_v52 = vadd.f32 %v1036_v19, %v1034_v18 }
 0x509   :  { %1038 = vrot.lane.b32.xlu0 %v1037_v52, %s1467_s2 }
 0x57b   :  { %v1039_v20 = vpop.permute.xlu0 %1038 }
 0x57c   :  { %v1040_v21 = vadd.f32 %v1039_v20, %v1037_v52 }
 0x57e   :  { %1041 = vrot.lane.b32.xlu1 %v1040_v21, %s1460_s15 }
 0x5f0   :  { %v1042_v59 = vpop.permute.xlu1 %1041 }
 0x5f1   :  { %v1043_v22 = vadd.f32 %v1042_v59, %v1040_v21 }
 0x5f3   :  { %v1044_v23 = vmul.f32 0.001953125, %v1043_v22 }
 0x5f5   :  { %v1045_v24 = vmul.f32 %v1044_v23, %v1044_v23 }
 0x5f7   :  { %v1047_v25 = vrot.slane %v1045_v24, 7 }
 0x5f9   :  { %v1049_v26 = vsub.f32 %v1044_v23, %v1047_v25 }
 0x5fb   :  { %v1050_v28 = vadd.f32 1e-05, %v1049_v26 }
 0x5fd   :  { %1371 = vrsqrt.f32 %v1050_v28 }
 0x60a   :  { %v1372_v29 = vpop.eup %1371 }
 0x60b   :  { %v1053_v32 = vrot.slane %v1372_v29, 1 }
 0x60d   :  { %v1055_v34 = vmul.f32 %v1053_v32, %v1007_v31 }
 0x60f   :  { %v1059_v35 = vrot.slane %v1055_v34, %v1602_v12  ;;  %v1064_v36 = vmul.f32 %v1055_v34, %v1044_v23 }
 0x611   :  { %v1065_v38 = vsub.f32 %v1008_v63, %v1064_v36  ;;  %v1060_v5 = vmul.f32 %v1059_v35, %v993_v40  ;;  %v1061_v39 = vmul.f32 %v1059_v35, %v996_v44  ;;  %v1062_v54 = vmul.f32 %v1059_v35, %v1001_v45 }
 0x612   :  { %v1063_v58 = vmul.f32 %v1059_v35, %v1004_v57 }
 0x613   :  { %v1069_v53 = vrot.slane %v1065_v38, %v1602_v12 }
 0x615   :  { %v1070_v4 = vadd.f32 %v1069_v53, %v1060_v5  ;;  %v1071_v41 = vadd.f32 %v1069_v53, %v1061_v39  ;;  %v1072_v42 = vadd.f32 %v1069_v53, %v1062_v54  ;;  %v1073_v43 = vadd.f32 %v1069_v53, %v1063_v58 }
 0x617   :  { %v1074_v46 = vadd.f32 %v1070_v4, %v1513_v27  ;;  %v1075_v47 = vadd.f32 %v1071_v41, %v1519_v30  ;;  %v1076_v48 = vadd.f32 %v1072_v42, %v1523_v33  ;;  %v1077_v49 = vadd.f32 %v1073_v43, %v1529_v37 }
 0x619   :  { %v1078_v40 = vmax.f32 %v1074_v46, 0.0  ;;  %v1079_v50 = vmax.f32 %v1075_v47, 0.0  ;;  %v1080_v12 = vmax.f32 %v1076_v48, 0.0  ;;  %v1081_v44 = vmax.f32 %v1077_v49, 0.0 }
 0x61b   :  { %1082 = vst [vmem:[#allocation9] sm:$0xff] %v1078_v40  ;;  %1083 = vst [vmem:[#allocation9 + $0x8] sm:$0xff] %v1079_v50 }
 0x61c   :  { %1084 = vst [vmem:[#allocation9 + $0x10] sm:$0xff] %v1080_v12  ;;  %1085 = vst [vmem:[#allocation9 + $0x18] sm:$0xff] %v1081_v44 }
 0x61d   :  { %1444 = shalt.err (!%p1441_p5)
}
 0x61e   :  { %1097 = dma.vmem_to_hbm [thread:$0]  %s1092_s4, 512, %s1646_s3, [#allocation5], %s1463_s22, %s1463_s22, %s1464_s23  }
 0x61f   :  { %1457 = dma.done.wait [#allocation5], 512  }
 0x620   :  { %1458 = vsyncadd [#allocation5], 4294966784 }
 0x621   :  { %1101 = vsyncpa [#allocation4], 1 }
 0x622   :  { %1102 = vsyncpa [#allocation7], 1 }
 0x623   :  { %1103 = vsyncpa [#allocation5], 1 }

</bundles_post_ra>
